<compile_context>
chip_gen: v7x
topology: tpu7x:2x2x1
jax: 0.10.0
libtpu: 0.0.40
codegen_flags: <defaults>
</compile_context>

<pallas_src>
import functools
import math

import jax
import jax.numpy as jnp
from jax.experimental import pallas as pl
from jax.experimental.pallas import tpu as pltpu


# ----------------------------- in-kernel helpers -----------------------------

def _erf(z):
    # Abramowitz & Stegun 7.1.26 rational approximation, max abs err 1.5e-7
    # (well inside f32 tolerance of torch's exact-erf nn.GELU()).
    a1, a2, a3, a4, a5 = (0.254829592, -0.284496736, 1.421413741,
                          -1.453152027, 1.061405429)
    p = 0.3275911
    az = jnp.abs(z)
    t = 1.0 / (1.0 + p * az)
    poly = ((((a5 * t + a4) * t + a3) * t + a2) * t + a1) * t
    y = 1.0 - poly * jnp.exp(-az * az)
    return jnp.where(z >= 0, y, -y)


def _gelu_exact(v):
    # matches torch nn.GELU() (erf formulation)
    return 0.5 * v * (1.0 + _erf(v * (1.0 / math.sqrt(2.0))))


# ------------------------------ fused block kernel ----------------------------

def _gpt_block_kernel(x_ref, ln1_g_ref, ln1_b_ref, wqkv_ref, bqkv_ref,
                      wo_ref, bo_ref, ln2_g_ref, ln2_b_ref,
                      w1_ref, b1_ref, w2_ref, b2_ref, o_ref, *, n_heads):
    B, S, E = x_ref.shape
    H = n_heads
    D = E // H

    # All position-wise work runs on the flat (B*S, E) view; row = b*S + s.
    x = x_ref[...].reshape(B * S, E)                       # f32

    def layer_norm(v, g, b):
        mu = jnp.mean(v, axis=-1, keepdims=True)
        c = v - mu
        var = jnp.mean(c * c, axis=-1, keepdims=True)
        return c * jax.lax.rsqrt(var + 1e-5) * g + b       # torch eps = 1e-5

    def matmul(a_f32, w_ref):
        # bf16 MXU matmul, f32 accumulation.  Weights are host-pre-transposed
        # to (in, out) so the RHS contracts on its leading dim (no relayout).
        return jnp.dot(a_f32.astype(jnp.bfloat16), w_ref[...],
                       preferred_element_type=jnp.float32)

    # ------------------------- attention branch -------------------------
    xn = layer_norm(x, ln1_g_ref[...], ln1_b_ref[...])          # (B*S, E) f32
    # Single fused QKV projection: N = 3E.  1/sqrt(D) q-scale is folded into
    # the q columns of the weight/bias on the host.
    qkv = matmul(xn, wqkv_ref) + bqkv_ref[...]                  # (B*S, 3E) f32
    qkv = qkv.astype(jnp.bfloat16)

    row = jax.lax.broadcasted_iota(jnp.int32, (S, S), 0)
    col = jax.lax.broadcasted_iota(jnp.int32, (S, S), 1)
    causal = (col <= row)[None]                                 # (1, S, S)

    # Per-head attention core: static lane slices of the fused QKV result,
    # batch-leading 3-D einsums (flash-style), softmax in f32.
    head_outs = []
    for h in range(H):
        qh = qkv[:, h * D:(h + 1) * D].reshape(B, S, D)
        kh = qkv[:, E + h * D:E + (h + 1) * D].reshape(B, S, D)
        vh = qkv[:, 2 * E + h * D:2 * E + (h + 1) * D].reshape(B, S, D)

        s = jnp.einsum("bqd,bkd->bqk", qh, kh,
                       preferred_element_type=jnp.float32)      # (B, S, S)
        s = jnp.where(causal, s, -1e30)                         # causal, NaN-safe
        s = s - jnp.max(s, axis=-1, keepdims=True)
        p = jnp.exp(s)
        p = p * pl.reciprocal(jnp.sum(p, axis=-1, keepdims=True), approx=True)
        head_outs.append(
            jnp.einsum("bqk,bkd->bqd", p.astype(jnp.bfloat16), vh,
                       preferred_element_type=jnp.float32))     # (B, S, D)

    # Lane-concat heads -> one output projection with K = E (single MXU matmul).
    attn_cat = jnp.concatenate(head_outs, axis=-1).reshape(B * S, E)
    attn = matmul(attn_cat, wo_ref) + bo_ref[...]               # (B*S, E) f32

    h1 = x + attn                                 # residual 1 (dropout = id)

    # ---------------------------- MLP branch ----------------------------
    hn = layer_norm(h1, ln2_g_ref[...], ln2_b_ref[...])
    m = _gelu_exact(matmul(hn, w1_ref) + b1_ref[...])           # (B*S, 4E) f32
    out = h1 + matmul(m, w2_ref) + b2_ref[...]    # residual 2 (dropout = id)

    o_ref[...] = out.reshape(B, S, E)


# --------------------------------- wrapper -----------------------------------

def gpt_block_forward(x_sbe, params, *, n_heads):
    """x_sbe: (S, B, E) — PyTorch MultiheadAttention layout (batch_first=False)."""
    S, B, E = x_sbe.shape
    D = E // n_heads
    scale = 1.0 / math.sqrt(D)

    # Wrapper transposes are negligible at these shapes; at real sizes accept
    # batch-first input at the API boundary instead.
    x = jnp.transpose(x_sbe, (1, 0, 2))                         # (B, S, E)

    # Host-side (free under jit) weight packing:
    #  * fused QKV weight transposed to (E, 3E) with the q-scale folded in,
    #  * out-proj / MLP weights transposed to (in, out),
    #  * all matmul weights cast to bfloat16 (halves weight bytes in VMEM).
    qscale = jnp.concatenate(
        [jnp.full((E,), scale, jnp.float32), jnp.ones((2 * E,), jnp.float32)])
    wqkv_t = (params["attn_in_w"].T * qscale[None, :]).astype(jnp.bfloat16)  # (E,3E)
    bqkv = (params["attn_in_b"] * qscale).reshape(1, 3 * E).astype(jnp.float32)

    wo_t = params["attn_out_w"].T.astype(jnp.bfloat16)          # (E, E)
    w1_t = params["mlp_w1"].T.astype(jnp.bfloat16)              # (E, 4E)
    w2_t = params["mlp_w2"].T.astype(jnp.bfloat16)              # (4E, E)

    vmem = lambda: pl.BlockSpec(memory_space=pltpu.MemorySpace.VMEM)

    out = pl.pallas_call(
        functools.partial(_gpt_block_kernel, n_heads=n_heads),
        out_shape=jax.ShapeDtypeStruct((B, S, E), jnp.float32),
        in_specs=[vmem() for _ in range(13)],
        out_specs=vmem(),
    )(
        x,
        params["ln1_g"].reshape(1, E), params["ln1_b"].reshape(1, E),
        wqkv_t, bqkv,
        wo_t, params["attn_out_b"].reshape(1, E),
        params["ln2_g"].reshape(1, E), params["ln2_b"].reshape(1, E),
        w1_t, params["mlp_b1"].reshape(1, 4 * E),
        w2_t, params["mlp_b2"].reshape(1, E),
    )
    return jnp.transpose(out, (1, 0, 2))                        # back to (S, B, E)


# ------------------------------ pure-JAX reference ----------------------------

def _reference_block(x_sbe, params, n_heads):
    S, B, E = x_sbe.shape
    D = E // n_heads

    def ln(v, g, b):
        mu = v.mean(-1, keepdims=True)
        var = ((v - mu) ** 2).mean(-1, keepdims=True)
        return (v - mu) / jnp.sqrt(var + 1e-5) * g + b

    x = jnp.transpose(x_sbe, (1, 0, 2))            # (B, S, E)
    xn = ln(x, params["ln1_g"], params["ln1_b"])
    qkv = xn @ params["attn_in_w"].T + params["attn_in_b"]
    q, k, v = jnp.split(qkv, 3, axis=-1)

    def heads(t):
        return t.reshape(B, S, n_heads, D).transpose(0, 2, 1, 3)

    q, k, v = heads(q) / math.sqrt(D), heads(k), heads(v)
    s = q @ jnp.swapaxes(k, -1, -2)
    mask = jnp.tril(jnp.ones((S, S), dtype=bool))
    s = jnp.where(mask, s, -jnp.inf)
    p = jax.nn.softmax(s, axis=-1)
    a = (p @ v).transpose(0, 2, 1, 3).reshape(B, S, E)
    a = a @ params["attn_out_w"].T + params["attn_out_b"]
    h = x + a
    hn = ln(h, params["ln2_g"], params["ln2_b"])
    m = jax.nn.gelu(hn @ params["mlp_w1"].T + params["mlp_b1"], approximate=False)
    h = h + m @ params["mlp_w2"].T + params["mlp_b2"]
    return jnp.transpose(h, (1, 0, 2))


# --------------------------------- params ------------------------------------

def init_params(key, emb):
    ks = jax.random.split(key, 12)
    s = 1.0 / math.sqrt(emb)

    def w(k, shape, scale=s):
        return (scale * jax.random.normal(k, shape)).astype(jnp.float32)

    return {
        "ln1_g": (1.0 + 0.1 * jax.random.normal(ks[0], (emb,))).astype(jnp.float32),
        "ln1_b": w(ks[1], (emb,), 0.05),
        "ln2_g": (1.0 + 0.1 * jax.random.normal(ks[2], (emb,))).astype(jnp.float32),
        "ln2_b": w(ks[3], (emb,), 0.05),
        "attn_in_w": w(ks[4], (3 * emb, emb)),
        "attn_in_b": w(ks[5], (3 * emb,), 0.02),
        "attn_out_w": w(ks[6], (emb, emb)),
        "attn_out_b": w(ks[7], (emb,), 0.02),
        "mlp_w1": w(ks[8], (4 * emb, emb)),
        "mlp_b1": w(ks[9], (4 * emb,), 0.02),
        "mlp_w2": w(ks[10], (emb, 4 * emb), 1.0 / math.sqrt(4 * emb)),
        "mlp_b2": w(ks[11], (emb,), 0.02),
    }


# ----------------------------------- main -------------------------------------

if __name__ == "__main__":
    EMB, HEADS = 32, 4
    SEQ, BATCH = 8, 2

    key = jax.random.PRNGKey(0)
    pkey, xkey = jax.random.split(key)
    params = init_params(pkey, EMB)
    x = jax.random.normal(xkey, (SEQ, BATCH, EMB), dtype=jnp.float32)  # (S, B, E)

    fwd = jax.jit(functools.partial(gpt_block_forward, n_heads=HEADS))
    out = fwd(x, params)
    jax.block_until_ready(out)

    assert out.shape == (SEQ, BATCH, EMB) and out.dtype == jnp.float32

    ref = _reference_block(x, params, HEADS)
    # bf16 matmuls (f32 accumulation) vs f32 reference -> scaled-error check.
    err = float(jnp.max(jnp.abs(out - ref) / (1.0 + jnp.abs(ref))))
    assert err < 5e-2, f"mismatch vs pure-JAX reference: max scaled err = {err}"

    print("KERNEL_OK")
</pallas_src>

<mosaic_0001>
module attributes {stable_mosaic.version = 11 : i64} {
  func.func @_gpt_block_kernel(%arg0: memref<2x8x32xf32, #tpu.memory_space<vmem>>, %arg1: memref<1x32xf32, #tpu.memory_space<vmem>>, %arg2: memref<1x32xf32, #tpu.memory_space<vmem>>, %arg3: memref<32x96xbf16, #tpu.memory_space<vmem>>, %arg4: memref<1x96xf32, #tpu.memory_space<vmem>>, %arg5: memref<32x32xbf16, #tpu.memory_space<vmem>>, %arg6: memref<1x32xf32, #tpu.memory_space<vmem>>, %arg7: memref<1x32xf32, #tpu.memory_space<vmem>>, %arg8: memref<1x32xf32, #tpu.memory_space<vmem>>, %arg9: memref<32x128xbf16, #tpu.memory_space<vmem>>, %arg10: memref<1x128xf32, #tpu.memory_space<vmem>>, %arg11: memref<128x32xbf16, #tpu.memory_space<vmem>>, %arg12: memref<1x32xf32, #tpu.memory_space<vmem>>, %arg13: memref<2x8x32xf32, #tpu.memory_space<vmem>>) attributes {dimension_semantics = [], scalar_prefetch = 0 : i64, scratch_operands = 0 : i64, tpu.core_type = #tpu.core_type<tc>} {
    %c0 = arith.constant 0 : index
    %c0_0 = arith.constant 0 : index
    %c0_1 = arith.constant 0 : index
    %0 = vector.load %arg0[%c0, %c0_0, %c0_1] : memref<2x8x32xf32, #tpu.memory_space<vmem>>, vector<2x8x32xf32>
    %1 = vector.shape_cast %0 : vector<2x8x32xf32> to vector<16x32xf32>
    %c0_2 = arith.constant 0 : index
    %c0_3 = arith.constant 0 : index
    %2 = vector.load %arg1[%c0_2, %c0_3] : memref<1x32xf32, #tpu.memory_space<vmem>>, vector<1x32xf32>
    %c0_4 = arith.constant 0 : index
    %c0_5 = arith.constant 0 : index
    %3 = vector.load %arg2[%c0_4, %c0_5] : memref<1x32xf32, #tpu.memory_space<vmem>>, vector<1x32xf32>
    %cst = arith.constant dense<0.000000e+00> : vector<16xf32>
    %4 = vector.multi_reduction <add>, %1, %cst [1] : vector<16x32xf32> to vector<16xf32>
    %5 = vector.shape_cast %4 : vector<16xf32> to vector<16x1xf32>
    %cst_6 = arith.constant 3.200000e+01 : f32
    %6 = vector.broadcast %cst_6 : f32 to vector<16x1xf32>
    %7 = arith.divf %5, %6 : vector<16x1xf32>
    %8 = vector.broadcast %7 : vector<16x1xf32> to vector<16x32xf32>
    %9 = arith.subf %1, %8 : vector<16x32xf32>
    %10 = arith.mulf %9, %9 : vector<16x32xf32>
    %cst_7 = arith.constant dense<0.000000e+00> : vector<16xf32>
    %11 = vector.multi_reduction <add>, %10, %cst_7 [1] : vector<16x32xf32> to vector<16xf32>
    %12 = vector.shape_cast %11 : vector<16xf32> to vector<16x1xf32>
    %cst_8 = arith.constant 3.200000e+01 : f32
    %13 = vector.broadcast %cst_8 : f32 to vector<16x1xf32>
    %14 = arith.divf %12, %13 : vector<16x1xf32>
    %cst_9 = arith.constant 9.99999974E-6 : f32
    %15 = vector.broadcast %cst_9 : f32 to vector<16x1xf32>
    %16 = arith.addf %14, %15 : vector<16x1xf32>
    %17 = math.rsqrt %16 : vector<16x1xf32>
    %18 = vector.broadcast %17 : vector<16x1xf32> to vector<16x32xf32>
    %19 = arith.mulf %9, %18 : vector<16x32xf32>
    %20 = vector.broadcast %2 : vector<1x32xf32> to vector<16x32xf32>
    %21 = arith.mulf %19, %20 : vector<16x32xf32>
    %22 = vector.broadcast %3 : vector<1x32xf32> to vector<16x32xf32>
    %23 = arith.addf %21, %22 : vector<16x32xf32>
    %24 = arith.truncf %23 : vector<16x32xf32> to vector<16x32xbf16>
    %c0_10 = arith.constant 0 : index
    %c0_11 = arith.constant 0 : index
    %25 = vector.load %arg3[%c0_10, %c0_11] : memref<32x96xbf16, #tpu.memory_space<vmem>>, vector<32x96xbf16>
    %cst_12 = arith.constant dense<0.000000e+00> : vector<16x96xf32>
    %26 = tpu.matmul %24, %25, %cst_12 {dimension_numbers = #tpu.dot_dimension_numbers<[1], [0], [0], [1], [0, 0, 1, 1], [], []>} : vector<16x32xbf16>, vector<32x96xbf16>, vector<16x96xf32> -> vector<16x96xf32>
    %c0_13 = arith.constant 0 : index
    %c0_14 = arith.constant 0 : index
    %27 = vector.load %arg4[%c0_13, %c0_14] : memref<1x96xf32, #tpu.memory_space<vmem>>, vector<1x96xf32>
    %28 = vector.broadcast %27 : vector<1x96xf32> to vector<16x96xf32>
    %29 = arith.addf %26, %28 : vector<16x96xf32>
    %30 = arith.truncf %29 : vector<16x96xf32> to vector<16x96xbf16>
    %31 = tpu.iota {dimensions = array<i32: 0>} : vector<8x8xi32>
    %32 = tpu.iota {dimensions = array<i32: 1>} : vector<8x8xi32>
    %33 = arith.cmpi sle, %32, %31 : vector<8x8xi32>
    %34 = vector.shape_cast %33 : vector<8x8xi1> to vector<1x8x8xi1>
    %35 = vector.extract_strided_slice %30 {offsets = [0, 0], sizes = [16, 8], strides = [1, 1]} : vector<16x96xbf16> to vector<16x8xbf16>
    %36 = vector.shape_cast %35 : vector<16x8xbf16> to vector<2x8x8xbf16>
    %37 = vector.extract_strided_slice %30 {offsets = [0, 32], sizes = [16, 8], strides = [1, 1]} : vector<16x96xbf16> to vector<16x8xbf16>
    %38 = vector.shape_cast %37 : vector<16x8xbf16> to vector<2x8x8xbf16>
    %39 = vector.extract_strided_slice %30 {offsets = [0, 64], sizes = [16, 8], strides = [1, 1]} : vector<16x96xbf16> to vector<16x8xbf16>
    %40 = vector.shape_cast %39 : vector<16x8xbf16> to vector<2x8x8xbf16>
    "tpu.trace_start"() <{level = 10 : i32, message = "bqd,bkd->bqk"}> : () -> ()
    %cst_15 = arith.constant dense<0.000000e+00> : vector<2x8x8xf32>
    %41 = tpu.matmul %36, %38, %cst_15 {dimension_numbers = #tpu.dot_dimension_numbers<[2], [2], [1], [1], [0, 0, 0, 1, 1, 1], [0], [0]>} : vector<2x8x8xbf16>, vector<2x8x8xbf16>, vector<2x8x8xf32> -> vector<2x8x8xf32>
    %cst_16 = arith.constant -1.000000e+30 : f32
    "tpu.trace_stop"() : () -> ()
    %42 = vector.shape_cast %34 : vector<1x8x8xi1> to vector<1x8x8xi1>
    %43 = vector.broadcast %42 : vector<1x8x8xi1> to vector<2x8x8xi1>
    %44 = vector.broadcast %cst_16 : f32 to vector<2x8x8xf32>
    %45 = arith.select %43, %41, %44 : vector<2x8x8xi1>, vector<2x8x8xf32>
    %cst_17 = arith.constant dense<0xFF800000> : vector<2x8xf32>
    %46 = vector.multi_reduction <maximumf>, %45, %cst_17 [2] : vector<2x8x8xf32> to vector<2x8xf32>
    %47 = vector.shape_cast %46 : vector<2x8xf32> to vector<2x8x1xf32>
    %48 = vector.broadcast %47 : vector<2x8x1xf32> to vector<2x8x8xf32>
    %49 = arith.subf %45, %48 : vector<2x8x8xf32>
    %50 = math.exp %49 : vector<2x8x8xf32>
    %cst_18 = arith.constant dense<0.000000e+00> : vector<2x8xf32>
    %51 = vector.multi_reduction <add>, %50, %cst_18 [2] : vector<2x8x8xf32> to vector<2x8xf32>
    %52 = vector.shape_cast %51 : vector<2x8xf32> to vector<2x8x1xf32>
    %53 = tpu.reciprocal %52 {approx = true} : vector<2x8x1xf32> -> vector<2x8x1xf32>
    %54 = vector.broadcast %53 : vector<2x8x1xf32> to vector<2x8x8xf32>
    %55 = arith.mulf %50, %54 : vector<2x8x8xf32>
    %56 = arith.truncf %55 : vector<2x8x8xf32> to vector<2x8x8xbf16>
    "tpu.trace_start"() <{level = 10 : i32, message = "bqk,bkd->bqd"}> : () -> ()
    %cst_19 = arith.constant dense<0.000000e+00> : vector<2x8x8xf32>
    %57 = tpu.matmul %56, %40, %cst_19 {dimension_numbers = #tpu.dot_dimension_numbers<[2], [1], [1], [2], [0, 0, 0, 1, 1, 2], [0], [0]>} : vector<2x8x8xbf16>, vector<2x8x8xbf16>, vector<2x8x8xf32> -> vector<2x8x8xf32>
    "tpu.trace_stop"() : () -> ()
    %58 = vector.extract_strided_slice %30 {offsets = [0, 8], sizes = [16, 8], strides = [1, 1]} : vector<16x96xbf16> to vector<16x8xbf16>
    %59 = vector.shape_cast %58 : vector<16x8xbf16> to vector<2x8x8xbf16>
    %60 = vector.extract_strided_slice %30 {offsets = [0, 40], sizes = [16, 8], strides = [1, 1]} : vector<16x96xbf16> to vector<16x8xbf16>
    %61 = vector.shape_cast %60 : vector<16x8xbf16> to vector<2x8x8xbf16>
    %62 = vector.extract_strided_slice %30 {offsets = [0, 72], sizes = [16, 8], strides = [1, 1]} : vector<16x96xbf16> to vector<16x8xbf16>
    %63 = vector.shape_cast %62 : vector<16x8xbf16> to vector<2x8x8xbf16>
    "tpu.trace_start"() <{level = 10 : i32, message = "bqd,bkd->bqk"}> : () -> ()
    %cst_20 = arith.constant dense<0.000000e+00> : vector<2x8x8xf32>
    %64 = tpu.matmul %59, %61, %cst_20 {dimension_numbers = #tpu.dot_dimension_numbers<[2], [2], [1], [1], [0, 0, 0, 1, 1, 1], [0], [0]>} : vector<2x8x8xbf16>, vector<2x8x8xbf16>, vector<2x8x8xf32> -> vector<2x8x8xf32>
    %cst_21 = arith.constant -1.000000e+30 : f32
    "tpu.trace_stop"() : () -> ()
    %65 = vector.shape_cast %34 : vector<1x8x8xi1> to vector<1x8x8xi1>
    %66 = vector.broadcast %65 : vector<1x8x8xi1> to vector<2x8x8xi1>
    %67 = vector.broadcast %cst_21 : f32 to vector<2x8x8xf32>
    %68 = arith.select %66, %64, %67 : vector<2x8x8xi1>, vector<2x8x8xf32>
    %cst_22 = arith.constant dense<0xFF800000> : vector<2x8xf32>
    %69 = vector.multi_reduction <maximumf>, %68, %cst_22 [2] : vector<2x8x8xf32> to vector<2x8xf32>
    %70 = vector.shape_cast %69 : vector<2x8xf32> to vector<2x8x1xf32>
    %71 = vector.broadcast %70 : vector<2x8x1xf32> to vector<2x8x8xf32>
    %72 = arith.subf %68, %71 : vector<2x8x8xf32>
    %73 = math.exp %72 : vector<2x8x8xf32>
    %cst_23 = arith.constant dense<0.000000e+00> : vector<2x8xf32>
    %74 = vector.multi_reduction <add>, %73, %cst_23 [2] : vector<2x8x8xf32> to vector<2x8xf32>
    %75 = vector.shape_cast %74 : vector<2x8xf32> to vector<2x8x1xf32>
    %76 = tpu.reciprocal %75 {approx = true} : vector<2x8x1xf32> -> vector<2x8x1xf32>
    %77 = vector.broadcast %76 : vector<2x8x1xf32> to vector<2x8x8xf32>
    %78 = arith.mulf %73, %77 : vector<2x8x8xf32>
    %79 = arith.truncf %78 : vector<2x8x8xf32> to vector<2x8x8xbf16>
    "tpu.trace_start"() <{level = 10 : i32, message = "bqk,bkd->bqd"}> : () -> ()
    %cst_24 = arith.constant dense<0.000000e+00> : vector<2x8x8xf32>
    %80 = tpu.matmul %79, %63, %cst_24 {dimension_numbers = #tpu.dot_dimension_numbers<[2], [1], [1], [2], [0, 0, 0, 1, 1, 2], [0], [0]>} : vector<2x8x8xbf16>, vector<2x8x8xbf16>, vector<2x8x8xf32> -> vector<2x8x8xf32>
    "tpu.trace_stop"() : () -> ()
    %81 = vector.extract_strided_slice %30 {offsets = [0, 16], sizes = [16, 8], strides = [1, 1]} : vector<16x96xbf16> to vector<16x8xbf16>
    %82 = vector.shape_cast %81 : vector<16x8xbf16> to vector<2x8x8xbf16>
    %83 = vector.extract_strided_slice %30 {offsets = [0, 48], sizes = [16, 8], strides = [1, 1]} : vector<16x96xbf16> to vector<16x8xbf16>
    %84 = vector.shape_cast %83 : vector<16x8xbf16> to vector<2x8x8xbf16>
    %85 = vector.extract_strided_slice %30 {offsets = [0, 80], sizes = [16, 8], strides = [1, 1]} : vector<16x96xbf16> to vector<16x8xbf16>
    %86 = vector.shape_cast %85 : vector<16x8xbf16> to vector<2x8x8xbf16>
    "tpu.trace_start"() <{level = 10 : i32, message = "bqd,bkd->bqk"}> : () -> ()
    %cst_25 = arith.constant dense<0.000000e+00> : vector<2x8x8xf32>
    %87 = tpu.matmul %82, %84, %cst_25 {dimension_numbers = #tpu.dot_dimension_numbers<[2], [2], [1], [1], [0, 0, 0, 1, 1, 1], [0], [0]>} : vector<2x8x8xbf16>, vector<2x8x8xbf16>, vector<2x8x8xf32> -> vector<2x8x8xf32>
    %cst_26 = arith.constant -1.000000e+30 : f32
    "tpu.trace_stop"() : () -> ()
    %88 = vector.shape_cast %34 : vector<1x8x8xi1> to vector<1x8x8xi1>
    %89 = vector.broadcast %88 : vector<1x8x8xi1> to vector<2x8x8xi1>
    %90 = vector.broadcast %cst_26 : f32 to vector<2x8x8xf32>
    %91 = arith.select %89, %87, %90 : vector<2x8x8xi1>, vector<2x8x8xf32>
    %cst_27 = arith.constant dense<0xFF800000> : vector<2x8xf32>
    %92 = vector.multi_reduction <maximumf>, %91, %cst_27 [2] : vector<2x8x8xf32> to vector<2x8xf32>
    %93 = vector.shape_cast %92 : vector<2x8xf32> to vector<2x8x1xf32>
    %94 = vector.broadcast %93 : vector<2x8x1xf32> to vector<2x8x8xf32>
    %95 = arith.subf %91, %94 : vector<2x8x8xf32>
    %96 = math.exp %95 : vector<2x8x8xf32>
    %cst_28 = arith.constant dense<0.000000e+00> : vector<2x8xf32>
    %97 = vector.multi_reduction <add>, %96, %cst_28 [2] : vector<2x8x8xf32> to vector<2x8xf32>
    %98 = vector.shape_cast %97 : vector<2x8xf32> to vector<2x8x1xf32>
    %99 = tpu.reciprocal %98 {approx = true} : vector<2x8x1xf32> -> vector<2x8x1xf32>
    %100 = vector.broadcast %99 : vector<2x8x1xf32> to vector<2x8x8xf32>
    %101 = arith.mulf %96, %100 : vector<2x8x8xf32>
    %102 = arith.truncf %101 : vector<2x8x8xf32> to vector<2x8x8xbf16>
    "tpu.trace_start"() <{level = 10 : i32, message = "bqk,bkd->bqd"}> : () -> ()
    %cst_29 = arith.constant dense<0.000000e+00> : vector<2x8x8xf32>
    %103 = tpu.matmul %102, %86, %cst_29 {dimension_numbers = #tpu.dot_dimension_numbers<[2], [1], [1], [2], [0, 0, 0, 1, 1, 2], [0], [0]>} : vector<2x8x8xbf16>, vector<2x8x8xbf16>, vector<2x8x8xf32> -> vector<2x8x8xf32>
    "tpu.trace_stop"() : () -> ()
    %104 = vector.extract_strided_slice %30 {offsets = [0, 24], sizes = [16, 8], strides = [1, 1]} : vector<16x96xbf16> to vector<16x8xbf16>
    %105 = vector.shape_cast %104 : vector<16x8xbf16> to vector<2x8x8xbf16>
    %106 = vector.extract_strided_slice %30 {offsets = [0, 56], sizes = [16, 8], strides = [1, 1]} : vector<16x96xbf16> to vector<16x8xbf16>
    %107 = vector.shape_cast %106 : vector<16x8xbf16> to vector<2x8x8xbf16>
    %108 = vector.extract_strided_slice %30 {offsets = [0, 88], sizes = [16, 8], strides = [1, 1]} : vector<16x96xbf16> to vector<16x8xbf16>
    %109 = vector.shape_cast %108 : vector<16x8xbf16> to vector<2x8x8xbf16>
    "tpu.trace_start"() <{level = 10 : i32, message = "bqd,bkd->bqk"}> : () -> ()
    %cst_30 = arith.constant dense<0.000000e+00> : vector<2x8x8xf32>
    %110 = tpu.matmul %105, %107, %cst_30 {dimension_numbers = #tpu.dot_dimension_numbers<[2], [2], [1], [1], [0, 0, 0, 1, 1, 1], [0], [0]>} : vector<2x8x8xbf16>, vector<2x8x8xbf16>, vector<2x8x8xf32> -> vector<2x8x8xf32>
    %cst_31 = arith.constant -1.000000e+30 : f32
    "tpu.trace_stop"() : () -> ()
    %111 = vector.shape_cast %34 : vector<1x8x8xi1> to vector<1x8x8xi1>
    %112 = vector.broadcast %111 : vector<1x8x8xi1> to vector<2x8x8xi1>
    %113 = vector.broadcast %cst_31 : f32 to vector<2x8x8xf32>
    %114 = arith.select %112, %110, %113 : vector<2x8x8xi1>, vector<2x8x8xf32>
    %cst_32 = arith.constant dense<0xFF800000> : vector<2x8xf32>
    %115 = vector.multi_reduction <maximumf>, %114, %cst_32 [2] : vector<2x8x8xf32> to vector<2x8xf32>
    %116 = vector.shape_cast %115 : vector<2x8xf32> to vector<2x8x1xf32>
    %117 = vector.broadcast %116 : vector<2x8x1xf32> to vector<2x8x8xf32>
    %118 = arith.subf %114, %117 : vector<2x8x8xf32>
    %119 = math.exp %118 : vector<2x8x8xf32>
    %cst_33 = arith.constant dense<0.000000e+00> : vector<2x8xf32>
    %120 = vector.multi_reduction <add>, %119, %cst_33 [2] : vector<2x8x8xf32> to vector<2x8xf32>
    %121 = vector.shape_cast %120 : vector<2x8xf32> to vector<2x8x1xf32>
    %122 = tpu.reciprocal %121 {approx = true} : vector<2x8x1xf32> -> vector<2x8x1xf32>
    %123 = vector.broadcast %122 : vector<2x8x1xf32> to vector<2x8x8xf32>
    %124 = arith.mulf %119, %123 : vector<2x8x8xf32>
    %125 = arith.truncf %124 : vector<2x8x8xf32> to vector<2x8x8xbf16>
    "tpu.trace_start"() <{level = 10 : i32, message = "bqk,bkd->bqd"}> : () -> ()
    %cst_34 = arith.constant dense<0.000000e+00> : vector<2x8x8xf32>
    %126 = tpu.matmul %125, %109, %cst_34 {dimension_numbers = #tpu.dot_dimension_numbers<[2], [1], [1], [2], [0, 0, 0, 1, 1, 2], [0], [0]>} : vector<2x8x8xbf16>, vector<2x8x8xbf16>, vector<2x8x8xf32> -> vector<2x8x8xf32>
    "tpu.trace_stop"() : () -> ()
    %127 = tpu.concatenate %57, %80, %103, %126 in 2 : vector<2x8x8xf32>, vector<2x8x8xf32>, vector<2x8x8xf32>, vector<2x8x8xf32> -> vector<2x8x32xf32>
    %128 = vector.shape_cast %127 : vector<2x8x32xf32> to vector<16x32xf32>
    %129 = arith.truncf %128 : vector<16x32xf32> to vector<16x32xbf16>
    %c0_35 = arith.constant 0 : index
    %c0_36 = arith.constant 0 : index
    %130 = vector.load %arg5[%c0_35, %c0_36] : memref<32x32xbf16, #tpu.memory_space<vmem>>, vector<32x32xbf16>
    %cst_37 = arith.constant dense<0.000000e+00> : vector<16x32xf32>
    %131 = tpu.matmul %129, %130, %cst_37 {dimension_numbers = #tpu.dot_dimension_numbers<[1], [0], [0], [1], [0, 0, 1, 1], [], []>} : vector<16x32xbf16>, vector<32x32xbf16>, vector<16x32xf32> -> vector<16x32xf32>
    %c0_38 = arith.constant 0 : index
    %c0_39 = arith.constant 0 : index
    %132 = vector.load %arg6[%c0_38, %c0_39] : memref<1x32xf32, #tpu.memory_space<vmem>>, vector<1x32xf32>
    %133 = vector.broadcast %132 : vector<1x32xf32> to vector<16x32xf32>
    %134 = arith.addf %131, %133 : vector<16x32xf32>
    %135 = arith.addf %1, %134 : vector<16x32xf32>
    %c0_40 = arith.constant 0 : index
    %c0_41 = arith.constant 0 : index
    %136 = vector.load %arg7[%c0_40, %c0_41] : memref<1x32xf32, #tpu.memory_space<vmem>>, vector<1x32xf32>
    %c0_42 = arith.constant 0 : index
    %c0_43 = arith.constant 0 : index
    %137 = vector.load %arg8[%c0_42, %c0_43] : memref<1x32xf32, #tpu.memory_space<vmem>>, vector<1x32xf32>
    %cst_44 = arith.constant dense<0.000000e+00> : vector<16xf32>
    %138 = vector.multi_reduction <add>, %135, %cst_44 [1] : vector<16x32xf32> to vector<16xf32>
    %139 = vector.shape_cast %138 : vector<16xf32> to vector<16x1xf32>
    %cst_45 = arith.constant 3.200000e+01 : f32
    %140 = vector.broadcast %cst_45 : f32 to vector<16x1xf32>
    %141 = arith.divf %139, %140 : vector<16x1xf32>
    %142 = vector.broadcast %141 : vector<16x1xf32> to vector<16x32xf32>
    %143 = arith.subf %135, %142 : vector<16x32xf32>
    %144 = arith.mulf %143, %143 : vector<16x32xf32>
    %cst_46 = arith.constant dense<0.000000e+00> : vector<16xf32>
    %145 = vector.multi_reduction <add>, %144, %cst_46 [1] : vector<16x32xf32> to vector<16xf32>
    %146 = vector.shape_cast %145 : vector<16xf32> to vector<16x1xf32>
    %cst_47 = arith.constant 3.200000e+01 : f32
    %147 = vector.broadcast %cst_47 : f32 to vector<16x1xf32>
    %148 = arith.divf %146, %147 : vector<16x1xf32>
    %cst_48 = arith.constant 9.99999974E-6 : f32
    %149 = vector.broadcast %cst_48 : f32 to vector<16x1xf32>
    %150 = arith.addf %148, %149 : vector<16x1xf32>
    %151 = math.rsqrt %150 : vector<16x1xf32>
    %152 = vector.broadcast %151 : vector<16x1xf32> to vector<16x32xf32>
    %153 = arith.mulf %143, %152 : vector<16x32xf32>
    %154 = vector.broadcast %136 : vector<1x32xf32> to vector<16x32xf32>
    %155 = arith.mulf %153, %154 : vector<16x32xf32>
    %156 = vector.broadcast %137 : vector<1x32xf32> to vector<16x32xf32>
    %157 = arith.addf %155, %156 : vector<16x32xf32>
    %158 = arith.truncf %157 : vector<16x32xf32> to vector<16x32xbf16>
    %c0_49 = arith.constant 0 : index
    %c0_50 = arith.constant 0 : index
    %159 = vector.load %arg9[%c0_49, %c0_50] : memref<32x128xbf16, #tpu.memory_space<vmem>>, vector<32x128xbf16>
    %cst_51 = arith.constant dense<0.000000e+00> : vector<16x128xf32>
    %160 = tpu.matmul %158, %159, %cst_51 {dimension_numbers = #tpu.dot_dimension_numbers<[1], [0], [0], [1], [0, 0, 1, 1], [], []>} : vector<16x32xbf16>, vector<32x128xbf16>, vector<16x128xf32> -> vector<16x128xf32>
    %c0_52 = arith.constant 0 : index
    %c0_53 = arith.constant 0 : index
    %161 = vector.load %arg10[%c0_52, %c0_53] : memref<1x128xf32, #tpu.memory_space<vmem>>, vector<1x128xf32>
    %162 = vector.broadcast %161 : vector<1x128xf32> to vector<16x128xf32>
    %163 = arith.addf %160, %162 : vector<16x128xf32>
    %cst_54 = arith.constant 5.000000e-01 : f32
    %164 = vector.broadcast %cst_54 : f32 to vector<16x128xf32>
    %165 = arith.mulf %164, %163 : vector<16x128xf32>
    %cst_55 = arith.constant 0.707106769 : f32
    %166 = vector.broadcast %cst_55 : f32 to vector<16x128xf32>
    %167 = arith.mulf %163, %166 : vector<16x128xf32>
    %168 = math.absf %167 : vector<16x128xf32>
    %cst_56 = arith.constant 0.327591091 : f32
    %169 = vector.broadcast %cst_56 : f32 to vector<16x128xf32>
    %170 = arith.mulf %169, %168 : vector<16x128xf32>
    %cst_57 = arith.constant 1.000000e+00 : f32
    %171 = vector.broadcast %cst_57 : f32 to vector<16x128xf32>
    %172 = arith.addf %171, %170 : vector<16x128xf32>
    %cst_58 = arith.constant 1.000000e+00 : f32
    %173 = vector.broadcast %cst_58 : f32 to vector<16x128xf32>
    %174 = arith.divf %173, %172 : vector<16x128xf32>
    %cst_59 = arith.constant 1.06140542 : f32
    %175 = vector.broadcast %cst_59 : f32 to vector<16x128xf32>
    %176 = arith.mulf %175, %174 : vector<16x128xf32>
    %cst_60 = arith.constant -1.45315206 : f32
    %177 = vector.broadcast %cst_60 : f32 to vector<16x128xf32>
    %178 = arith.addf %176, %177 : vector<16x128xf32>
    %179 = arith.mulf %178, %174 : vector<16x128xf32>
    %cst_61 = arith.constant 1.42141378 : f32
    %180 = vector.broadcast %cst_61 : f32 to vector<16x128xf32>
    %181 = arith.addf %179, %180 : vector<16x128xf32>
    %182 = arith.mulf %181, %174 : vector<16x128xf32>
    %cst_62 = arith.constant -0.284496725 : f32
    %183 = vector.broadcast %cst_62 : f32 to vector<16x128xf32>
    %184 = arith.addf %182, %183 : vector<16x128xf32>
    %185 = arith.mulf %184, %174 : vector<16x128xf32>
    %cst_63 = arith.constant 0.254829586 : f32
    %186 = vector.broadcast %cst_63 : f32 to vector<16x128xf32>
    %187 = arith.addf %185, %186 : vector<16x128xf32>
    %188 = arith.mulf %187, %174 : vector<16x128xf32>
    %cst_64 = arith.constant 0.000000e+00 : f32
    %189 = vector.broadcast %cst_64 : f32 to vector<16x128xf32>
    %190 = arith.subf %189, %168 : vector<16x128xf32>
    %191 = arith.mulf %190, %168 : vector<16x128xf32>
    %192 = math.exp %191 : vector<16x128xf32>
    %193 = arith.mulf %188, %192 : vector<16x128xf32>
    %cst_65 = arith.constant 1.000000e+00 : f32
    %194 = vector.broadcast %cst_65 : f32 to vector<16x128xf32>
    %195 = arith.subf %194, %193 : vector<16x128xf32>
    %cst_66 = arith.constant 0.000000e+00 : f32
    %196 = vector.broadcast %cst_66 : f32 to vector<16x128xf32>
    %197 = arith.cmpf oge, %167, %196 : vector<16x128xf32>
    %cst_67 = arith.constant 0.000000e+00 : f32
    %198 = vector.broadcast %cst_67 : f32 to vector<16x128xf32>
    %199 = arith.subf %198, %195 : vector<16x128xf32>
    %200 = arith.select %197, %195, %199 : vector<16x128xi1>, vector<16x128xf32>
    %cst_68 = arith.constant 1.000000e+00 : f32
    %201 = vector.broadcast %cst_68 : f32 to vector<16x128xf32>
    %202 = arith.addf %201, %200 : vector<16x128xf32>
    %203 = arith.mulf %165, %202 : vector<16x128xf32>
    %204 = arith.truncf %203 : vector<16x128xf32> to vector<16x128xbf16>
    %c0_69 = arith.constant 0 : index
    %c0_70 = arith.constant 0 : index
    %205 = vector.load %arg11[%c0_69, %c0_70] : memref<128x32xbf16, #tpu.memory_space<vmem>>, vector<128x32xbf16>
    %cst_71 = arith.constant dense<0.000000e+00> : vector<16x32xf32>
    %206 = tpu.matmul %204, %205, %cst_71 {dimension_numbers = #tpu.dot_dimension_numbers<[1], [0], [0], [1], [0, 0, 1, 1], [], []>} : vector<16x128xbf16>, vector<128x32xbf16>, vector<16x32xf32> -> vector<16x32xf32>
    %207 = arith.addf %135, %206 : vector<16x32xf32>
    %c0_72 = arith.constant 0 : index
    %c0_73 = arith.constant 0 : index
    %208 = vector.load %arg12[%c0_72, %c0_73] : memref<1x32xf32, #tpu.memory_space<vmem>>, vector<1x32xf32>
    %209 = vector.broadcast %208 : vector<1x32xf32> to vector<16x32xf32>
    %210 = arith.addf %207, %209 : vector<16x32xf32>
    %211 = vector.shape_cast %210 : vector<16x32xf32> to vector<2x8x32xf32>
    %c0_74 = arith.constant 0 : index
    %c0_75 = arith.constant 0 : index
    %c0_76 = arith.constant 0 : index
    %212 = vector.load %arg13[%c0_74, %c0_75, %c0_76] : memref<2x8x32xf32, #tpu.memory_space<vmem>>, vector<2x8x32xf32>
    tpu.vector_store %arg13[%c0_74, %c0_75, %c0_76], %211 {strides = array<i32>} : memref<2x8x32xf32, #tpu.memory_space<vmem>>, vector<2x8x32xf32>,
    return
  }
}

</mosaic_0001>

<bundles_post_ra>
// kernel: gpt_block_forward.1
= control target key start
LH: loop header
LB: loop body
LE: loop exit
PB: predicated region body
PF: predicated region fallthrough
CT: control target
= control target key end

     0   :  { %vm49_vm0 = vcmask 261120   ;;  %v1779_v15 = vmov 0.0   ;;  %vm1780_vm1 = vmmov 0   ;;  %vm174_vm2 = vcmask 64512   ;;  %s1784_s20 = smov 120   ;;  %s1785_s21 = smov 56   ;;  %s2159_s0 = inlined_call_operand.vmem [shape: f32[2,8,32], index: 0, kind: input, shape index: {}]   ;;  %s2160_s3 = inlined_call_operand.vmem [shape: bf16[32,96], index: 3, kind: input, shape index: {}]   ;;  %s2161_s1 = inlined_call_operand.vmem [shape: f32[1,32], index: 1, kind: input, shape index: {}]   ;;  %s2162_s2 = inlined_call_operand.vmem [shape: f32[1,32], index: 2, kind: input, shape index: {}]   ;;  %s2163_s4 = inlined_call_operand.vmem [shape: f32[1,96], index: 4, kind: input, shape index: {}]   ;;  %s2164_s5 = inlined_call_operand.vmem [shape: bf16[32,32], index: 5, kind: input, shape index: {}]   ;;  %s2165_s6 = inlined_call_operand.vmem [shape: f32[1,32], index: 6, kind: input, shape index: {}]   ;;  %s2166_s9 = inlined_call_operand.vmem [shape: bf16[32,128], index: 9, kind: input, shape index: {}]   ;;  %s2167_s7 = inlined_call_operand.vmem [shape: f32[1,32], index: 7, kind: input, shape index: {}]   ;;  %s2168_s8 = inlined_call_operand.vmem [shape: f32[1,32], index: 8, kind: input, shape index: {}]   ;;  %s2169_s11 = inlined_call_operand.vmem [shape: bf16[128,32], index: 11, kind: input, shape index: {}]   ;;  %s2170_s10 = inlined_call_operand.vmem [shape: f32[1,128], index: 10, kind: input, shape index: {}]   ;;  %s2171_s12 = inlined_call_operand.vmem [shape: f32[1,32], index: 12, kind: input, shape index: {}]   ;;  %s2172_s13 = inlined_call_operand.vmem [shape: f32[2,8,32], index: 13, kind: output, shape index: {}]  }
   0x1   :  { %v1868_v0 = vld [vmem:[%s2159_s0] sm:$0xff]  ;;  %v1873_v1 = vld [vmem:[%s2159_s0 + $0x8] sm:$0xff]  ;;  %1546 = vmatprep.subr.bf16.mxu0 %v1779_v15  ;;  %1566 = vmatprep.subr.bf16.mxu1 %v1779_v15  ;;  %v162_v47 = vlaneseq  ;;  %vm302_vm4 = vcmask 1043456   ;;  %s1786_s22 = smov 80   ;;  %s1787_s23 = smov 112   ;;  %vm1086_vm5 = vcmask 130048  }
   0x2   :  { %v50_v2 = vsel %vm49_vm0, %v1868_v0, 0.0  ;;  %v53_v3 = vsel %vm49_vm0, %v1873_v1, 0.0  ;;  %v1717_v14 = vld [vmem:[%s2160_s3] sm:$0xff]   ;;  %v1718_v16 = vld [vmem:[%s2160_s3 + $0x8] sm:$0xff]   ;;  %1550 = vmatprep.mubr.msk.bf16.mxu0 %vm1780_vm1, %v1779_v15  ;;  %1568 = vmatprep.mubr.msk.bf16.mxu1 %vm1780_vm1, %v1779_v15  ;;  %s1788_s24 = smov 48   ;;  %s1789_s25 = smov 72  }
   0x3   :  { %51 = vadd.xlane.f32.xlu0 %v50_v2  ;;  %1547 = vmatpush3.bf16.msra.mxu0 %v1717_v14  ;;  %v1451_v25 = vld [vmem:[%s2161_s1] ss:$0 sm:$0xff]  ;;  %s1781_s1 = smov 96   ;;  %v163_v48 = vshrl.u32 %v162_v47, 7  ;;  %v165_v49 = vand.u32 127, %v162_v47  ;;  %s1790_s26 = smov 104  }
   0x4   :  { %1548 = vmatprep.subr.bf16.mxu0 %v1779_v15  ;;  %v1452_v29 = vld [vmem:[%s2162_s2] ss:$0 sm:$0xff]  ;;  %s1782_s2 = smov 64   ;;  %s1791_s27 = smov 40   ;;  %vm1089_vm6 = vcmask 195584  }
   0x5   :  { %v1453_v34 = vld [vmem:[%s2163_s4] ss:$0 sm:$0xff]  ;;  %vm1927_vm3 = vcmp.le.s32.totalorder %v165_v49, %v163_v48  ;;  %s1783_s4 = smov 88   ;;  %s1792_s28 = smov 8  }
   0x6   :  { %s1793_s0 = smov 16   ;;  %s1794_s15 = smov 24  }
   0x7   :  { %54 = vadd.xlane.f32.xlu0 %v53_v3  ;;  %1549 = vmatpush3.bf16.msra.mxu0 %v1718_v16 }
   0x8   :  { %1554 = vmatprep.subr.bf16.mxu0 %v1779_v15 }
  0x90   :  { %v52_v4 = vpop.xlane.xlu0 %51 }
  0x91   :  { %v57_v5 = vmul.f32 0.03125, %v52_v4 }
  0x93   :  { %v59_v6 = vsub.f32 %v1868_v0, %v57_v5 }
  0x94   :  { %v55_v7 = vpop.xlane.xlu0 %54 }
  0x95   :  { %v58_v8 = vmul.f32 0.03125, %v55_v7  ;;  %v61_v9 = vmul.f32 %v59_v6, %v59_v6 }
  0x97   :  { %v60_v10 = vsub.f32 %v1873_v1, %v58_v8  ;;  %v63_v11 = vsel %vm49_vm0, %v61_v9, 0.0 }
  0x98   :  { %64 = vadd.xlane.f32.xlu1 %v63_v11 }
  0x99   :  { %v62_v12 = vmul.f32 %v60_v10, %v60_v10 }
  0x9b   :  { %v66_v13 = vsel %vm49_vm0, %v62_v12, 0.0 }
  0x9c   :  { %67 = vadd.xlane.f32.xlu1 %v66_v13 }
 0x125   :  { %v65_v17 = vpop.xlane.xlu1 %64 }
 0x126   :  { %v69_v18 = vmul.f32 0.03125, %v65_v17 }
 0x128   :  { %v71_v19 = vadd.f32 1e-05, %v69_v18 }
 0x129   :  { %v68_v20 = vpop.xlane.xlu1 %67 }
 0x12a   :  { %1731 = vrsqrt.f32 %v71_v19  ;;  %v70_v21 = vmul.f32 0.03125, %v68_v20 }
 0x12c   :  { %v72_v22 = vadd.f32 1e-05, %v70_v21 }
 0x12e   :  { %1733 = vrsqrt.f32 %v72_v22 }
 0x134   :  { %v1732_v23 = vpop.eup %1731 }
 0x135   :  { %v75_v24 = vmul.f32 %v1732_v23, %v59_v6 }
 0x137   :  { %v83_v28 = vmul.f32 %v1451_v25, %v75_v24 }
 0x138   :  { %v1734_v26 = vpop.eup %1733 }
 0x139   :  { %v76_v27 = vmul.f32 %v1734_v26, %v60_v10  ;;  %v91_v31 = vadd.f32 %v1452_v29, %v83_v28 }
 0x13b   :  { %v84_v30 = vmul.f32 %v1451_v25, %v76_v27 }
 0x13d   :  { %v92_v32 = vadd.f32 %v1452_v29, %v84_v30 }
 0x13f   :  { %v93_v33 = vpack.c.bf16 %v92_v32, %v91_v31 }
 0x141   :  { %1551 = vmatmul.mubr.msk.bf16.vlgmr.msra.gmra.mrb[0].mxu0 %vm49_vm0, %v93_v33 }
 0x142   :  { %1556 = vmatprep.mubr.msk.bf16.mxu0 %vm1780_vm1, %v1779_v15 }
 0x214   :  { %v154_v35 = vpop.f32.mrb[0].mxu0 }
 0x215   :  { %v155_v36 = vadd.f32 %v1453_v34, %v154_v35  ;;  %v1552_v37 = vpop.f32.mrb[1].mxu0 }
 0x216   :  { %v157_v38 = vpop.f32.mrb[2].mxu0 }
 0x217   :  { %v1909_v39 = vpack.c.bf16 %v155_v36, %v155_v36  ;;  %v158_v40 = vadd.f32 %v1453_v34, %v157_v38  ;;  %v1553_v41 = vpop.f32.mrb[3].mxu0 }
 0x219   :  { %v1911_v42 = vpack.c.bf16 %v158_v40, %v158_v40  ;;  %172 = vrot.lane.b32.xlu0 %v1909_v39, %s1781_s1 }
 0x21b   :  { %221 = vrot.lane.b32.xlu1 %v1911_v42, %s1781_s1 }
 0x28b   :  { %v173_v43 = vpop.permute.xlu0 %172 }
 0x28c   :  { %v179_v44 = vsel %vm174_vm2, %v173_v43, 0 }
 0x28d   :  { %1555 = vmatpush3.bf16.xpose.msra.mxu0 %v179_v44  ;;  %v222_v45 = vpop.permute.xlu1 %221 }
 0x28e   :  { %1560 = vmatprep.subr.bf16.mxu0 %v1779_v15  ;;  %v227_v46 = vsel %vm174_vm2, %v222_v45, 0 }
 0x294   :  { %1557 = vmatmul.mubr.msk.bf16.vlgmr.msra.gmra.mrb[4].mxu0 %vm174_vm2, %v1909_v39 }
 0x295   :  { %1561 = vmatpush3.bf16.xpose.msra.mxu0 %v227_v46  ;;  %1562 = vmatprep.mubr.msk.bf16.mxu0 %vm1780_vm1, %v1779_v15 }
 0x296   :  { %1572 = vmatprep.subr.bf16.mxu0 %v1779_v15 }
 0x29c   :  { %1563 = vmatmul.mubr.msk.bf16.vlgmr.msra.gmra.mrb[8].mxu0 %vm174_vm2, %v1911_v42 }
 0x29d   :  { %1574 = vmatprep.mubr.msk.bf16.mxu0 %vm1780_vm1, %v1779_v15 }
 0x367   :  { %v215_v51 = vpop.f32.mrb[4].mxu0 }
 0x368   :  { %v271_v52 = vsel %vm1927_vm3, %v215_v51, -1e+30  ;;  %v1558_v53 = vpop.f32.mrb[5].mxu0 }
 0x369   :  { %v218_v54 = vpop.f32.mrb[6].mxu0  ;;  %v273_v55 = vsel %vm174_vm2, %v271_v52, -inf }
 0x36a   :  { %274 = vmax.xlane.f32.xlu1 %v273_v55  ;;  %v1559_v56 = vpop.f32.mrb[7].mxu0 }
 0x36f   :  { %v263_v57 = vpop.f32.mrb[8].mxu0 }
 0x370   :  { %v272_v58 = vsel %vm1927_vm3, %v263_v57, -1e+30  ;;  %v1564_v59 = vpop.f32.mrb[9].mxu0 }
 0x371   :  { %v266_v60 = vpop.f32.mrb[10].mxu0  ;;  %v276_v61 = vsel %vm174_vm2, %v272_v58, -inf }
 0x372   :  { %277 = vmax.xlane.f32.xlu0 %v276_v61  ;;  %v1565_v62 = vpop.f32.mrb[11].mxu0 }
 0x37b   :  { %346 = vrot.lane.b32.xlu1 %v1911_v42, %s1782_s2 }
 0x37f   :  { %396 = vrot.lane.b32.xlu1 %v1909_v39, %s1783_s4 }
 0x3f7   :  { %v275_v63 = vpop.xlane.xlu1 %274 }
 0x3f8   :  { %v279_v2 = vsub.f32 %v271_v52, %v275_v63 }
 0x3fa   :  { %v281_v3 = vmul.f32 1.442695, %v279_v2 }
 0x3fb   :  { %v347_v4 = vpop.permute.xlu1 %346 }
 0x3fc   :  { %1735 = vpow2.f32 %v281_v3  ;;  %v352_v5 = vsel %vm302_vm4, %v347_v4, 0 }
 0x3fd   :  { %1573 = vmatpush3.bf16.msra.mxu0 %v352_v5 }
 0x3fe   :  { %1584 = vmatprep.subr.bf16.mxu0 %v1779_v15 }
 0x3ff   :  { %v278_v6 = vpop.xlane.xlu0 %277  ;;  %v397_v14 = vpop.permute.xlu1 %396 }
 0x400   :  { %v280_v7 = vsub.f32 %v272_v58, %v278_v6  ;;  %v402_v22 = vsel %vm174_vm2, %v397_v14, 0 }
 0x402   :  { %v283_v8 = vmul.f32 1.442695, %v280_v7 }
 0x404   :  { %1737 = vpow2.f32 %v283_v8 }
 0x406   :  { %v1736_v9 = vpop.eup %1735 }
 0x407   :  { %v285_v10 = vsel %vm174_vm2, %v1736_v9, 0.0 }
 0x408   :  { %286 = vadd.xlane.f32.xlu0 %v285_v10 }
 0x40e   :  { %v1738_v11 = vpop.eup %1737 }
 0x40f   :  { %v288_v12 = vsel %vm174_vm2, %v1738_v11, 0.0 }
 0x410   :  { %289 = vadd.xlane.f32.xlu1 %v288_v12 }
 0x41e   :  { %297 = vrot.lane.b32.xlu0 %v1909_v39, %s1782_s2 }
 0x421   :  { %446 = vrot.lane.b32.xlu1 %v1911_v42, %s1783_s4 }
 0x422   :  { %394 = vrot.lane.b32.xlu0 %v1909_v39, %s1784_s20 }
 0x425   :  { %444 = vrot.lane.b32.xlu1 %v1911_v42, %s1784_s20 }
 0x495   :  { %v287_v13 = vpop.xlane.xlu0 %286 }
 0x496   :  { %1739 = vrcp.f32 %v287_v13 }
 0x499   :  { %v298_v16 = vpop.permute.xlu0 %297 }
 0x49a   :  { %v304_v17 = vsel %vm302_vm4, %v298_v16, 0 }
 0x49b   :  { %1567 = vmatpush3.bf16.msra.mxu1 %v304_v17 }
 0x49c   :  { %1578 = vmatprep.subr.bf16.mxu1 %v1779_v15 }
 0x49d   :  { %v290_v18 = vpop.xlane.xlu1 %289  ;;  %v395_v27 = vpop.permute.xlu0 %394 }
 0x49e   :  { %1741 = vrcp.f32 %v290_v18 }
 0x4a0   :  { %v1740_v19 = vpop.eup %1739 }
 0x4a1   :  { %v293_v20 = vmul.f32 %v1740_v19, %v1736_v9  ;;  %v447_v25 = vpop.permute.xlu1 %446 }
 0x4a2   :  { %v452_v28 = vsel %vm174_vm2, %v447_v25, 0 }
 0x4a3   :  { %v295_v21 = vpack.c.bf16 %v293_v20, %v293_v20 }
 0x4a5   :  { %1569 = vmatmul.mubr.msk.bf16.vlgmr.msra.gmra.mrb[0].mxu1 %vm174_vm2, %v295_v21  ;;  %v445_v29 = vpop.permute.xlu1 %444 }
 0x4a6   :  { %1579 = vmatpush3.bf16.xpose.msra.mxu1 %v402_v22  ;;  %1580 = vmatprep.mubr.msk.bf16.mxu1 %vm1780_vm1, %v1779_v15 }
 0x4a7   :  { %1590 = vmatprep.subr.bf16.mxu1 %v1779_v15 }
 0x4a8   :  { %v1742_v23 = vpop.eup %1741 }
 0x4a9   :  { %v294_v24 = vmul.f32 %v1742_v23, %v1738_v11 }
 0x4ab   :  { %v296_v26 = vpack.c.bf16 %v294_v24, %v294_v24 }
 0x4ad   :  { %1575 = vmatmul.mubr.msk.bf16.vlgmr.msra.gmra.mrb[12].mxu0 %vm174_vm2, %v296_v26  ;;  %1581 = vmatmul.mubr.msk.bf16.vlgmr.msra.gmra.mrb[4].mxu1 %vm174_vm2, %v395_v27 }
 0x4ae   :  { %1585 = vmatpush3.bf16.xpose.msra.mxu0 %v452_v28  ;;  %1586 = vmatprep.mubr.msk.bf16.mxu0 %vm1780_vm1, %v1779_v15 }
 0x4af   :  { %1596 = vmatprep.subr.bf16.mxu0 %v1779_v15  ;;  %1592 = vmatprep.mubr.msk.bf16.mxu1 %vm1780_vm1, %v1779_v15 }
 0x4b5   :  { %1587 = vmatmul.mubr.msk.bf16.vlgmr.msra.gmra.mrb[16].mxu0 %vm174_vm2, %v445_v29 }
 0x4b6   :  { %1598 = vmatprep.mubr.msk.bf16.mxu0 %vm1780_vm1, %v1779_v15 }
 0x578   :  { %v1965_v30 = vpop.f32.mrb[0].mxu1 }
 0x579   :  { %v1570_v31 = vpop.f32.mrb[1].mxu1 }
 0x57a   :  { %v343_v32 = vpop.f32.mrb[2].mxu1 }
 0x57b   :  { %v1571_v33 = vpop.f32.mrb[3].mxu1 }
 0x580   :  { %v1967_v34 = vpop.f32.mrb[12].mxu0  ;;  %v438_v35 = vpop.f32.mrb[4].mxu1 }
 0x581   :  { %v494_v36 = vsel %vm1927_vm3, %v438_v35, -1e+30  ;;  %v1576_v37 = vpop.f32.mrb[13].mxu0  ;;  %v1582_v38 = vpop.f32.mrb[5].mxu1 }
 0x582   :  { %v391_v40 = vpop.f32.mrb[14].mxu0  ;;  %v441_v41 = vpop.f32.mrb[6].mxu1  ;;  %v496_v43 = vsel %vm174_vm2, %v494_v36, -inf }
 0x583   :  { %497 = vmax.xlane.f32.xlu0 %v496_v43  ;;  %v1577_v44 = vpop.f32.mrb[15].mxu0  ;;  %v1583_v45 = vpop.f32.mrb[7].mxu1 }
 0x588   :  { %v488_v46 = vpop.f32.mrb[16].mxu0 }
 0x589   :  { %v495_v47 = vsel %vm1927_vm3, %v488_v46, -1e+30  ;;  %v1588_v48 = vpop.f32.mrb[17].mxu0 }
 0x58a   :  { %v491_v49 = vpop.f32.mrb[18].mxu0  ;;  %v499_v51 = vsel %vm174_vm2, %v495_v47, -inf }
 0x58b   :  { %500 = vmax.xlane.f32.xlu1 %v499_v51  ;;  %v1589_v52 = vpop.f32.mrb[19].mxu0 }
 0x59c   :  { %568 = vrot.lane.b32.xlu1 %v1911_v42, %s1785_s21 }
 0x5a0   :  { %618 = vrot.lane.b32.xlu1 %v1909_v39, %s1786_s22 }
 0x5a4   :  { %668 = vrot.lane.b32.xlu1 %v1911_v42, %s1786_s22 }
 0x5a8   :  { %666 = vrot.lane.b32.xlu1 %v1911_v42, %s1787_s23 }
 0x610   :  { %v498_v53 = vpop.xlane.xlu0 %497 }
 0x611   :  { %v502_v54 = vsub.f32 %v494_v36, %v498_v53 }
 0x613   :  { %v504_v55 = vmul.f32 1.442695, %v502_v54 }
 0x615   :  { %1743 = vpow2.f32 %v504_v55 }
 0x618   :  { %v501_v56 = vpop.xlane.xlu1 %500 }
 0x619   :  { %v503_v57 = vsub.f32 %v495_v47, %v501_v56 }
 0x61b   :  { %v506_v58 = vmul.f32 1.442695, %v503_v57 }
 0x61c   :  { %v569_v59 = vpop.permute.xlu1 %568 }
 0x61d   :  { %1745 = vpow2.f32 %v506_v58  ;;  %v574_v60 = vsel %vm302_vm4, %v569_v59, 0 }
 0x61e   :  { %1597 = vmatpush3.bf16.msra.mxu0 %v574_v60 }
 0x61f   :  { %v1744_v61 = vpop.eup %1743  ;;  %1608 = vmatprep.subr.bf16.mxu0 %v1779_v15 }
 0x620   :  { %v508_v62 = vsel %vm174_vm2, %v1744_v61, 0.0  ;;  %v619_v10 = vpop.permute.xlu1 %618 }
 0x621   :  { %509 = vadd.xlane.f32.xlu0 %v508_v62  ;;  %v624_v14 = vsel %vm174_vm2, %v619_v10, 0 }
 0x624   :  { %v669_v13 = vpop.permute.xlu1 %668 }
 0x625   :  { %v674_v17 = vsel %vm174_vm2, %v669_v13, 0 }
 0x627   :  { %v1746_v63 = vpop.eup %1745 }
 0x628   :  { %v511_v2 = vsel %vm174_vm2, %v1746_v63, 0.0  ;;  %v667_v19 = vpop.permute.xlu1 %666 }
 0x629   :  { %512 = vadd.xlane.f32.xlu0 %v511_v2 }
 0x63f   :  { %520 = vrot.lane.b32.xlu0 %v1909_v39, %s1785_s21 }
 0x643   :  { %616 = vrot.lane.b32.xlu0 %v1909_v39, %s1787_s23 }
 0x6ae   :  { %v510_v3 = vpop.xlane.xlu0 %509 }
 0x6af   :  { %1747 = vrcp.f32 %v510_v3 }
 0x6b6   :  { %v513_v4 = vpop.xlane.xlu0 %512 }
 0x6b7   :  { %1749 = vrcp.f32 %v513_v4 }
 0x6b9   :  { %v1748_v5 = vpop.eup %1747 }
 0x6ba   :  { %v516_v6 = vmul.f32 %v1748_v5, %v1744_v61  ;;  %v521_v7 = vpop.permute.xlu0 %520 }
 0x6bb   :  { %v526_v8 = vsel %vm302_vm4, %v521_v7, 0 }
 0x6bc   :  { %1591 = vmatpush3.bf16.msra.mxu1 %v526_v8  ;;  %v518_v9 = vpack.c.bf16 %v516_v6, %v516_v6 }
 0x6bd   :  { %1602 = vmatprep.subr.bf16.mxu1 %v1779_v15 }
 0x6be   :  { %v617_v18 = vpop.permute.xlu0 %616 }
 0x6bf   :  { %1593 = vmatmul.mubr.msk.bf16.vlgmr.msra.gmra.mrb[8].mxu1 %vm174_vm2, %v518_v9 }
 0x6c0   :  { %1604 = vmatprep.mubr.msk.bf16.mxu1 %vm1780_vm1, %v1779_v15 }
 0x6c1   :  { %v1750_v11 = vpop.eup %1749 }
 0x6c2   :  { %v517_v12 = vmul.f32 %v1750_v11, %v1746_v63 }
 0x6c4   :  { %v519_v16 = vpack.c.bf16 %v517_v12, %v517_v12 }
 0x6c5   :  { %1603 = vmatpush3.bf16.xpose.msra.mxu1 %v624_v14 }
 0x6c6   :  { %1599 = vmatmul.mubr.msk.bf16.vlgmr.msra.gmra.mrb[20].mxu0 %vm174_vm2, %v519_v16  ;;  %1614 = vmatprep.subr.bf16.mxu1 %v1779_v15 }
 0x6c7   :  { %1609 = vmatpush3.bf16.xpose.msra.mxu0 %v674_v17  ;;  %1610 = vmatprep.mubr.msk.bf16.mxu0 %vm1780_vm1, %v1779_v15 }
 0x6c8   :  { %1620 = vmatprep.subr.bf16.mxu0 %v1779_v15 }
 0x6cc   :  { %1605 = vmatmul.mubr.msk.bf16.vlgmr.msra.gmra.mrb[12].mxu1 %vm174_vm2, %v617_v18 }
 0x6cd   :  { %1616 = vmatprep.mubr.msk.bf16.mxu1 %vm1780_vm1, %v1779_v15 }
 0x6ce   :  { %1611 = vmatmul.mubr.msk.bf16.vlgmr.msra.gmra.mrb[24].mxu0 %vm174_vm2, %v667_v19 }
 0x6cf   :  { %1622 = vmatprep.mubr.msk.bf16.mxu0 %vm1780_vm1, %v1779_v15 }
 0x792   :  { %v2003_v20 = vpop.f32.mrb[8].mxu1 }
 0x793   :  { %v1594_v21 = vpop.f32.mrb[9].mxu1 }
 0x794   :  { %v565_v22 = vpop.f32.mrb[10].mxu1 }
 0x795   :  { %v1595_v23 = vpop.f32.mrb[11].mxu1 }
 0x799   :  { %v2005_v24 = vpop.f32.mrb[20].mxu0 }
 0x79a   :  { %v1702_v25 = vpack.i.bf16 %v2005_v24, %v2003_v20  ;;  %v1600_v26 = vpop.f32.mrb[21].mxu0 }
 0x79b   :  { %v613_v27 = vpop.f32.mrb[22].mxu0 }
 0x79c   :  { %v1601_v28 = vpop.f32.mrb[23].mxu0 }
 0x79f   :  { %v660_v29 = vpop.f32.mrb[12].mxu1 }
 0x7a0   :  { %v716_v31 = vsel %vm1927_vm3, %v660_v29, -1e+30  ;;  %v1606_v32 = vpop.f32.mrb[13].mxu1 }
 0x7a1   :  { %v663_v33 = vpop.f32.mrb[14].mxu1  ;;  %v710_v35 = vpop.f32.mrb[24].mxu0  ;;  %v718_v36 = vsel %vm174_vm2, %v716_v31, -inf }
 0x7a2   :  { %v717_v37 = vsel %vm1927_vm3, %v710_v35, -1e+30  ;;  %719 = vmax.xlane.f32.xlu0 %v718_v36  ;;  %v1607_v38 = vpop.f32.mrb[15].mxu1  ;;  %v1612_v40 = vpop.f32.mrb[25].mxu0 }
 0x7a3   :  { %v713_v41 = vpop.f32.mrb[26].mxu0  ;;  %v721_v43 = vsel %vm174_vm2, %v717_v37, -inf }
 0x7a4   :  { %722 = vmax.xlane.f32.xlu1 %v721_v43  ;;  %v1613_v44 = vpop.f32.mrb[27].mxu0 }
 0x7b5   :  { %790 = vrot.lane.b32.xlu1 %v1911_v42, %s1788_s24 }
 0x7b9   :  { %840 = vrot.lane.b32.xlu1 %v1909_v39, %s1789_s25 }
 0x7bd   :  { %890 = vrot.lane.b32.xlu1 %v1911_v42, %s1789_s25 }
 0x7c1   :  { %888 = vrot.lane.b32.xlu1 %v1911_v42, %s1790_s26 }
 0x82f   :  { %v720_v45 = vpop.xlane.xlu0 %719 }
 0x830   :  { %v724_v46 = vsub.f32 %v716_v31, %v720_v45 }
 0x831   :  { %v723_v47 = vpop.xlane.xlu1 %722 }
 0x832   :  { %v726_v48 = vmul.f32 1.442695, %v724_v46  ;;  %v725_v49 = vsub.f32 %v717_v37, %v723_v47 }
 0x834   :  { %1751 = vpow2.f32 %v726_v48  ;;  %v728_v51 = vmul.f32 1.442695, %v725_v49 }
 0x835   :  { %v791_v52 = vpop.permute.xlu1 %790 }
 0x836   :  { %1753 = vpow2.f32 %v728_v51  ;;  %v796_v53 = vsel %vm302_vm4, %v791_v52, 0 }
 0x837   :  { %1621 = vmatpush3.bf16.msra.mxu0 %v796_v53 }
 0x838   :  { %1632 = vmatprep.subr.bf16.mxu0 %v1779_v15 }
 0x839   :  { %v841_v63 = vpop.permute.xlu1 %840 }
 0x83a   :  { %v846_v7 = vsel %vm174_vm2, %v841_v63, 0 }
 0x83d   :  { %v891_v6 = vpop.permute.xlu1 %890 }
 0x83e   :  { %v1752_v54 = vpop.eup %1751  ;;  %v896_v9 = vsel %vm174_vm2, %v891_v6, 0 }
 0x83f   :  { %v730_v55 = vsel %vm174_vm2, %v1752_v54, 0.0 }
 0x840   :  { %v1754_v56 = vpop.eup %1753  ;;  %731 = vadd.xlane.f32.xlu0 %v730_v55 }
 0x841   :  { %v733_v57 = vsel %vm174_vm2, %v1754_v56, 0.0  ;;  %v889_v11 = vpop.permute.xlu1 %888 }
 0x844   :  { %734 = vadd.xlane.f32.xlu0 %v733_v57 }
 0x85a   :  { %742 = vrot.lane.b32.xlu0 %v1909_v39, %s1788_s24 }
 0x85e   :  { %838 = vrot.lane.b32.xlu0 %v1909_v39, %s1790_s26 }
 0x8cd   :  { %v732_v58 = vpop.xlane.xlu0 %731 }
 0x8ce   :  { %1755 = vrcp.f32 %v732_v58  ;;  %v1719_v58 = vld [vmem:[%s2164_s5] sm:$0xff]  }
 0x8d1   :  { %v735_v59 = vpop.xlane.xlu0 %734 }
 0x8d2   :  { %1757 = vrcp.f32 %v735_v59  ;;  %v1720_v59 = vld [vmem:[%s2164_s5 + $0x8] sm:$0xff]  }
 0x8d5   :  { %v743_v60 = vpop.permute.xlu0 %742 }
 0x8d6   :  { %v748_v61 = vsel %vm302_vm4, %v743_v60, 0 }
 0x8d7   :  { %1615 = vmatpush3.bf16.msra.mxu1 %v748_v61 }
 0x8d8   :  { %v1756_v62 = vpop.eup %1755  ;;  %1626 = vmatprep.subr.bf16.mxu1 %v1779_v15 }
 0x8d9   :  { %v738_v2 = vmul.f32 %v1756_v62, %v1752_v54  ;;  %v839_v10 = vpop.permute.xlu0 %838 }
 0x8db   :  { %v740_v3 = vpack.c.bf16 %v738_v2, %v738_v2 }
 0x8dc   :  { %v1758_v4 = vpop.eup %1757 }
 0x8dd   :  { %v739_v5 = vmul.f32 %v1758_v4, %v1754_v56  ;;  %1617 = vmatmul.mubr.msk.bf16.vlgmr.msra.gmra.mrb[16].mxu1 %vm174_vm2, %v740_v3 }
 0x8de   :  { %1628 = vmatprep.mubr.msk.bf16.mxu1 %vm1780_vm1, %v1779_v15 }
 0x8df   :  { %v741_v8 = vpack.c.bf16 %v739_v5, %v739_v5 }
 0x8e0   :  { %1627 = vmatpush3.bf16.xpose.msra.mxu1 %v846_v7 }
 0x8e1   :  { %1623 = vmatmul.mubr.msk.bf16.vlgmr.msra.gmra.mrb[28].mxu0 %vm174_vm2, %v741_v8  ;;  %1638 = vmatprep.subr.bf16.mxu1 %v1779_v15 }
 0x8e2   :  { %1633 = vmatpush3.bf16.xpose.msra.mxu0 %v896_v9  ;;  %1634 = vmatprep.mubr.msk.bf16.mxu0 %vm1780_vm1, %v1779_v15 }
 0x8e3   :  { %1644 = vmatprep.subr.bf16.mxu0 %v1779_v15 }
 0x8e7   :  { %1629 = vmatmul.mubr.msk.bf16.vlgmr.msra.gmra.mrb[20].mxu1 %vm174_vm2, %v839_v10 }
 0x8e8   :  { %1640 = vmatprep.mubr.msk.bf16.mxu1 %vm1780_vm1, %v1779_v15 }
 0x8e9   :  { %1635 = vmatmul.mubr.msk.bf16.vlgmr.msra.gmra.mrb[32].mxu0 %vm174_vm2, %v889_v11 }
 0x8ea   :  { %1646 = vmatprep.mubr.msk.bf16.mxu0 %vm1780_vm1, %v1779_v15 }
 0x9b0   :  { %v784_v12 = vpop.f32.mrb[16].mxu1 }
 0x9b1   :  { %v1618_v13 = vpop.f32.mrb[17].mxu1 }
 0x9b2   :  { %v787_v14 = vpop.f32.mrb[18].mxu1 }
 0x9b3   :  { %v1619_v16 = vpop.f32.mrb[19].mxu1 }
 0x9b4   :  { %v832_v17 = vpop.f32.mrb[28].mxu0 }
 0x9b5   :  { %v1707_v18 = vpack.i.bf16 %v832_v17, %v784_v12  ;;  %v1624_v19 = vpop.f32.mrb[29].mxu0 }
 0x9b6   :  { %v835_v21 = vpop.f32.mrb[30].mxu0 }
 0x9b7   :  { %v1625_v22 = vpop.f32.mrb[31].mxu0 }
 0x9ba   :  { %v882_v23 = vpop.f32.mrb[20].mxu1 }
 0x9bb   :  { %v938_v26 = vsel %vm1927_vm3, %v882_v23, -1e+30  ;;  %v1630_v27 = vpop.f32.mrb[21].mxu1 }
 0x9bc   :  { %v885_v28 = vpop.f32.mrb[22].mxu1  ;;  %v932_v29 = vpop.f32.mrb[32].mxu0  ;;  %v940_v31 = vsel %vm174_vm2, %v938_v26, -inf  ;;  %v1475_v27 = vld [vmem:[%s2165_s6] ss:$0 sm:$0xff] }
 0x9bd   :  { %v939_v32 = vsel %vm1927_vm3, %v932_v29, -1e+30  ;;  %941 = vmax.xlane.f32.xlu0 %v940_v31  ;;  %v1631_v33 = vpop.f32.mrb[23].mxu1  ;;  %v1636_v35 = vpop.f32.mrb[33].mxu0 }
 0x9be   :  { %v935_v36 = vpop.f32.mrb[34].mxu0  ;;  %v943_v37 = vsel %vm174_vm2, %v939_v32, -inf }
 0x9bf   :  { %944 = vmax.xlane.f32.xlu1 %v943_v37  ;;  %v1637_v38 = vpop.f32.mrb[35].mxu0 }
 0x9d0   :  { %1012 = vrot.lane.b32.xlu1 %v1911_v42, %s1791_s27 }
 0x9d4   :  { %1703 = vrot.lane.b32.xlu1 %v1702_v25, %s1792_s28 }
 0x9d8   :  { %1708 = vrot.lane.b32.xlu1 %v1707_v18, %s1793_s0 }
 0xa4a   :  { %v942_v50 = vpop.xlane.xlu0 %941 }
 0xa4b   :  { %v946_v40 = vsub.f32 %v938_v26, %v942_v50 }
 0xa4c   :  { %v945_v41 = vpop.xlane.xlu1 %944 }
 0xa4d   :  { %v948_v43 = vmul.f32 1.442695, %v946_v40  ;;  %v947_v44 = vsub.f32 %v939_v32, %v945_v41 }
 0xa4f   :  { %1759 = vpow2.f32 %v948_v43  ;;  %v950_v45 = vmul.f32 1.442695, %v947_v44 }
 0xa50   :  { %v1013_v46 = vpop.permute.xlu1 %1012 }
 0xa51   :  { %1761 = vpow2.f32 %v950_v45  ;;  %v1018_v47 = vsel %vm302_vm4, %v1013_v46, 0 }
 0xa52   :  { %1645 = vmatpush3.bf16.msra.mxu0 %v1018_v47  ;;  %v1721_v47 = vld [vmem:[%s2166_s9] sm:$0xff]  }
 0xa53   :  { %1658 = vmatprep.subr.bf16.mxu0 %v1779_v15 }
 0xa54   :  { %v1704_v7 = vpop.permute.xlu1 %1703 }
 0xa55   :  { %v1706_v9 = vunpack.i.h.bf16 %v1704_v7  ;;  %v1705_v10 = vunpack.i.l.bf16 %v1704_v7  ;;  %v1730_v7 = vld [vmem:[%s2169_s11 + $0x38] sm:$0xff]  }
 0xa57   :  { %v1085_v14 = vsel %vm174_vm2, %v1967_v34, %v1706_v9  ;;  %v1084_v16 = vsel %vm174_vm2, %v1965_v30, %v1705_v10 }
 0xa58   :  { %v1709_v8 = vpop.permute.xlu1 %1708 }
 0xa59   :  { %v1760_v42 = vpop.eup %1759  ;;  %v1711_v11 = vunpack.i.h.bf16 %v1709_v8  ;;  %v1710_v12 = vunpack.i.l.bf16 %v1709_v8  ;;  %v1481_v8 = vld [vmem:[%s2170_s10] ss:$0 sm:$0xff] }
 0xa5a   :  { %v952_v20 = vsel %vm174_vm2, %v1760_v42, 0.0 }
 0xa5b   :  { %v1762_v24 = vpop.eup %1761  ;;  %953 = vadd.xlane.f32.xlu0 %v952_v20  ;;  %v1087_v19 = vsel %vm1086_vm5, %v1084_v16, %v1710_v12  ;;  %v1088_v21 = vsel %vm1086_vm5, %v1085_v14, %v1711_v11 }
 0xa5c   :  { %v955_v25 = vsel %vm174_vm2, %v1762_v24, 0.0 }
 0xa5f   :  { %956 = vadd.xlane.f32.xlu0 %v955_v25 }
 0xa75   :  { %964 = vrot.lane.b32.xlu0 %v1909_v39, %s1791_s27 }
 0xae8   :  { %v954_v48 = vpop.xlane.xlu0 %953 }
 0xae9   :  { %1763 = vrcp.f32 %v954_v48 }
 0xaec   :  { %v957_v49 = vpop.xlane.xlu0 %956 }
 0xaed   :  { %1765 = vrcp.f32 %v957_v49 }
 0xaf0   :  { %v965_v51 = vpop.permute.xlu0 %964 }
 0xaf1   :  { %v970_v52 = vsel %vm302_vm4, %v965_v51, 0 }
 0xaf2   :  { %1639 = vmatpush3.bf16.msra.mxu1 %v970_v52 }
 0xaf3   :  { %v1764_v53 = vpop.eup %1763  ;;  %1650 = vmatprep.subr.bf16.mxu1 %v1779_v15 }
 0xaf4   :  { %v960_v54 = vmul.f32 %v1764_v53, %v1760_v42  ;;  %v1722_v42 = vld [vmem:[%s2166_s9 + $0x8] sm:$0xff]  }
 0xaf6   :  { %v962_v55 = vpack.c.bf16 %v960_v54, %v960_v54  ;;  %v1479_v54 = vld [vmem:[%s2167_s7] ss:$0 sm:$0xff] }
 0xaf7   :  { %v1766_v56 = vpop.eup %1765 }
 0xaf8   :  { %v961_v57 = vmul.f32 %v1766_v56, %v1762_v24  ;;  %1641 = vmatmul.mubr.msk.bf16.vlgmr.msra.gmra.mrb[24].mxu1 %vm174_vm2, %v962_v55 }
 0xaf9   :  { %1654 = vmatprep.mubr.msk.bf16.mxu1 %vm1780_vm1, %v1779_v15  ;;  %1651 = vmatpush3.bf16.msra.mxu1 %v1719_v58 }
 0xafa   :  { %v963_v39 = vpack.c.bf16 %v961_v57, %v961_v57  ;;  %1652 = vmatprep.subr.bf16.mxu1 %v1779_v15 }
 0xafc   :  { %1647 = vmatmul.mubr.msk.bf16.vlgmr.msra.gmra.mrb[36].mxu0 %vm174_vm2, %v963_v39  ;;  %v1480_v39 = vld [vmem:[%s2168_s8] ss:$0 sm:$0xff] }
 0xafd   :  { %1662 = vmatprep.mubr.msk.bf16.mxu0 %vm1780_vm1, %v1779_v15  ;;  %1653 = vmatpush3.bf16.msra.mxu1 %v1720_v59 }
 0xafe   :  { %1666 = vmatprep.subr.bf16.mxu1 %v1779_v15  ;;  %1659 = vmatpush3.bf16.msra.mxu0 %v1721_v47 }
 0xaff   :  { %1660 = vmatprep.subr.bf16.mxu0 %v1779_v15 }
 0xb02   :  { %1661 = vmatpush3.bf16.msra.mxu0 %v1722_v42 }
 0xbcb   :  { %v1006_v60 = vpop.f32.mrb[24].mxu1 }
 0xbcc   :  { %v1642_v61 = vpop.f32.mrb[25].mxu1 }
 0xbcd   :  { %v1009_v62 = vpop.f32.mrb[26].mxu1 }
 0xbce   :  { %v1643_v63 = vpop.f32.mrb[27].mxu1  ;;  %v1723_v62 = vld [vmem:[%s2169_s11] sm:$0xff]  }
 0xbcf   :  { %v1054_v2 = vpop.f32.mrb[36].mxu0  ;;  %v1724_v63 = vld [vmem:[%s2169_s11 + $0x8] sm:$0xff]  }
 0xbd0   :  { %v1712_v3 = vpack.i.bf16 %v1054_v2, %v1006_v60  ;;  %v1648_v4 = vpop.f32.mrb[37].mxu0  ;;  %v1725_v2 = vld [vmem:[%s2169_s11 + $0x10] sm:$0xff]  }
 0xbd1   :  { %v1057_v5 = vpop.f32.mrb[38].mxu0  ;;  %v1727_v4 = vld [vmem:[%s2169_s11 + $0x20] sm:$0xff]  }
 0xbd2   :  { %1713 = vrot.lane.b32.xlu0 %v1712_v3, %s1794_s15  ;;  %v1649_v6 = vpop.f32.mrb[39].mxu0  ;;  %v1726_v3 = vld [vmem:[%s2169_s11 + $0x18] sm:$0xff]   ;;  %v1728_v5 = vld [vmem:[%s2169_s11 + $0x28] sm:$0xff]  }
 0xbd3   :  { %v1729_v6 = vld [vmem:[%s2169_s11 + $0x30] sm:$0xff]  }
 0xc44   :  { %v1714_v13 = vpop.permute.xlu0 %1713 }
 0xc45   :  { %v1716_v17 = vunpack.i.h.bf16 %v1714_v13  ;;  %v1715_v18 = vunpack.i.l.bf16 %v1714_v13 }
 0xc47   :  { %v1091_v22 = vsel %vm1089_vm6, %v1088_v21, %v1716_v17  ;;  %v1090_v23 = vsel %vm1089_vm6, %v1087_v19, %v1715_v18 }
 0xc48   :  { %v1092_v26 = vpack.c.bf16 %v1091_v22, %v1090_v23 }
 0xc4a   :  { %1655 = vmatmul.mubr.msk.bf16.vlgmr.msra.gmra.mrb[28].mxu1 %vm49_vm0, %v1092_v26 }
 0xc4b   :  { %1682 = vmatprep.mubr.msk.bf16.mxu1 %vm1780_vm1, %v1779_v15  ;;  %1667 = vmatpush3.bf16.msra.mxu1 %v1723_v62 }
 0xc4c   :  { %1668 = vmatprep.subr.bf16.mxu1 %v1779_v15 }
 0xc4f   :  { %1669 = vmatpush3.bf16.msra.mxu1 %v1724_v63 }
 0xc50   :  { %1670 = vmatprep.subr.bf16.mxu1 %v1779_v15 }
 0xc53   :  { %1671 = vmatpush3.bf16.msra.mxu1 %v1725_v2 }
 0xc54   :  { %1672 = vmatprep.subr.bf16.mxu1 %v1779_v15 }
 0xc57   :  { %1673 = vmatpush3.bf16.msra.mxu1 %v1726_v3 }
 0xc58   :  { %1674 = vmatprep.subr.bf16.mxu1 %v1779_v15 }
 0xc5b   :  { %1675 = vmatpush3.bf16.msra.mxu1 %v1727_v4 }
 0xc5c   :  { %1676 = vmatprep.subr.bf16.mxu1 %v1779_v15 }
 0xc5f   :  { %1677 = vmatpush3.bf16.msra.mxu1 %v1728_v5  ;;  %v1493_v5 = vld [vmem:[%s2171_s12] ss:$0 sm:$0xff] }
 0xc60   :  { %1678 = vmatprep.subr.bf16.mxu1 %v1779_v15 }
 0xc63   :  { %1679 = vmatpush3.bf16.msra.mxu1 %v1729_v6 }
 0xc64   :  { %1680 = vmatprep.subr.bf16.mxu1 %v1779_v15 }
 0xc67   :  { %1681 = vmatpush3.bf16.msra.mxu1 %v1730_v7 }
 0xd1d   :  { %v1153_v34 = vpop.f32.mrb[28].mxu1 }
 0xd1e   :  { %v1154_v28 = vadd.f32 %v1475_v27, %v1153_v34  ;;  %v1656_v29 = vpop.f32.mrb[29].mxu1 }
 0xd1f   :  { %v1156_v30 = vpop.f32.mrb[30].mxu1 }
 0xd20   :  { %v2085_v31 = vadd.f32 %v1154_v28, %v1868_v0  ;;  %v1157_v32 = vadd.f32 %v1475_v27, %v1156_v30  ;;  %v1657_v33 = vpop.f32.mrb[31].mxu1 }
 0xd22   :  { %v2088_v35 = vadd.f32 %v1157_v32, %v1873_v1  ;;  %v1164_v36 = vsel %vm49_vm0, %v2085_v31, 0.0 }
 0xd23   :  { %1165 = vadd.xlane.f32.xlu1 %v1164_v36 }
 0xd24   :  { %v1167_v37 = vsel %vm49_vm0, %v2088_v35, 0.0 }
 0xd25   :  { %1168 = vadd.xlane.f32.xlu0 %v1167_v37 }
 0xdb0   :  { %v1166_v38 = vpop.xlane.xlu1 %1165 }
 0xdb1   :  { %v1170_v50 = vmul.f32 0.03125, %v1166_v38 }
 0xdb2   :  { %v1169_v40 = vpop.xlane.xlu0 %1168 }
 0xdb3   :  { %v1172_v41 = vsub.f32 %v2085_v31, %v1170_v50  ;;  %v1171_v0 = vmul.f32 0.03125, %v1169_v40 }
 0xdb5   :  { %v1173_v43 = vsub.f32 %v2088_v35, %v1171_v0  ;;  %v1174_v44 = vmul.f32 %v1172_v41, %v1172_v41 }
 0xdb7   :  { %v1176_v1 = vsel %vm49_vm0, %v1174_v44, 0.0  ;;  %v1175_v45 = vmul.f32 %v1173_v43, %v1173_v43 }
 0xdb8   :  { %1177 = vadd.xlane.f32.xlu0 %v1176_v1 }
 0xdb9   :  { %v1179_v46 = vsel %vm49_vm0, %v1175_v45, 0.0 }
 0xdbc   :  { %1180 = vadd.xlane.f32.xlu0 %v1179_v46 }
 0xe45   :  { %v1178_v20 = vpop.xlane.xlu0 %1177 }
 0xe46   :  { %v1182_v24 = vmul.f32 0.03125, %v1178_v20 }
 0xe48   :  { %v1184_v25 = vadd.f32 1e-05, %v1182_v24 }
 0xe49   :  { %v1181_v48 = vpop.xlane.xlu0 %1180 }
 0xe4a   :  { %1767 = vrsqrt.f32 %v1184_v25  ;;  %v1183_v49 = vmul.f32 0.03125, %v1181_v48 }
 0xe4c   :  { %v1185_v51 = vadd.f32 1e-05, %v1183_v49 }
 0xe4e   :  { %1769 = vrsqrt.f32 %v1185_v51 }
 0xe54   :  { %v1768_v52 = vpop.eup %1767 }
 0xe55   :  { %v1188_v53 = vmul.f32 %v1768_v52, %v1172_v41 }
 0xe57   :  { %v1196_v56 = vmul.f32 %v1479_v54, %v1188_v53 }
 0xe58   :  { %v1770_v55 = vpop.eup %1769 }
 0xe59   :  { %v1189_v57 = vmul.f32 %v1770_v55, %v1173_v43  ;;  %v1204_v59 = vadd.f32 %v1480_v39, %v1196_v56 }
 0xe5b   :  { %v1197_v58 = vmul.f32 %v1479_v54, %v1189_v57 }
 0xe5d   :  { %v1205_v60 = vadd.f32 %v1480_v39, %v1197_v58 }
 0xe5f   :  { %v1206_v61 = vpack.c.bf16 %v1205_v60, %v1204_v59 }
 0xe61   :  { %1663 = vmatmul.mubr.msk.bf16.vlgmr.msra.gmra.mrb[40].mxu0 %vm49_vm0, %v1206_v61 }
 0xf34   :  { %v1267_v9 = vpop.f32.mrb[40].mxu0 }
 0xf35   :  { %v1268_v10 = vadd.f32 %v1481_v8, %v1267_v9  ;;  %v1664_v11 = vpop.f32.mrb[41].mxu0 }
 0xf36   :  { %v1270_v12 = vpop.f32.mrb[42].mxu0 }
 0xf37   :  { %v1276_v13 = vmul.f32 0.70710677, %v1268_v10  ;;  %v1271_v14 = vadd.f32 %v1481_v8, %v1270_v12  ;;  %v1665_v16 = vpop.f32.mrb[43].mxu0  ;;  %v1274_v60 = vmul.f32 0.5, %v1268_v10 }
 0xf39   :  { %v1278_v17 = vand.u32 2147483647, %v1276_v13  ;;  %v1277_v18 = vmul.f32 0.70710677, %v1271_v14  ;;  %vm1318_vm7 = vcmp.ge.f32.partialorder %v1276_v13, 0.0  ;;  %v1275_v61 = vmul.f32 0.5, %v1271_v14 }
 0xf3b   :  { %v1280_v19 = vmul.f32 0.3275911, %v1278_v17  ;;  %v1279_v15 = vand.u32 2147483647, %v1277_v18  ;;  %v1306_v26 = vsub.f32 0.0, %v1278_v17  ;;  %vm1319_vm8 = vcmp.ge.f32.partialorder %v1277_v18, 0.0 }
 0xf3d   :  { %v1282_v21 = vadd.f32 1.0, %v1280_v19  ;;  %v1281_v22 = vmul.f32 0.3275911, %v1279_v15  ;;  %v1307_v27 = vsub.f32 0.0, %v1279_v15  ;;  %v1308_v28 = vmul.f32 %v1306_v26, %v1278_v17 }
 0xf3f   :  { %1771 = vrcp.f32 %v1282_v21  ;;  %v1283_v23 = vadd.f32 1.0, %v1281_v22  ;;  %v1309_v33 = vmul.f32 %v1307_v27, %v1279_v15  ;;  %v1310_v36 = vmul.f32 1.442695, %v1308_v28 }
 0xf41   :  { %1773 = vrcp.f32 %v1283_v23  ;;  %v1312_v41 = vmul.f32 1.442695, %v1309_v33 }
 0xf42   :  { %1775 = vpow2.f32 %v1310_v36 }
 0xf43   :  { %1777 = vpow2.f32 %v1312_v41 }
 0xf49   :  { %v1772_v34 = vpop.eup %1771 }
 0xf4a   :  { %v1288_v29 = vmul.f32 1.0614054, %v1772_v34 }
 0xf4b   :  { %v1774_v30 = vpop.eup %1773 }
 0xf4c   :  { %v1290_v32 = vadd.f32 -1.4531521, %v1288_v29  ;;  %v1289_v37 = vmul.f32 1.0614054, %v1774_v30  ;;  %v1776_v25 = vpop.eup %1775 }
 0xf4d   :  { %v1778_v52 = vpop.eup %1777 }
 0xf4e   :  { %v1292_v38 = vmul.f32 %v1772_v34, %v1290_v32  ;;  %v1291_v50 = vadd.f32 -1.4531521, %v1289_v37 }
 0xf50   :  { %v1294_v40 = vadd.f32 1.4214138, %v1292_v38  ;;  %v1293_v0 = vmul.f32 %v1774_v30, %v1291_v50 }
 0xf52   :  { %v1296_v43 = vmul.f32 %v1772_v34, %v1294_v40  ;;  %v1295_v44 = vadd.f32 1.4214138, %v1293_v0 }
 0xf54   :  { %v1298_v1 = vadd.f32 -0.28449672, %v1296_v43  ;;  %v1297_v45 = vmul.f32 %v1774_v30, %v1295_v44 }
 0xf56   :  { %v1300_v46 = vmul.f32 %v1772_v34, %v1298_v1  ;;  %v1299_v47 = vadd.f32 -0.28449672, %v1297_v45 }
 0xf58   :  { %v1302_v42 = vadd.f32 0.2548296, %v1300_v46  ;;  %v1301_v20 = vmul.f32 %v1774_v30, %v1299_v47 }
 0xf5a   :  { %v1304_v24 = vmul.f32 %v1772_v34, %v1302_v42  ;;  %v1303_v48 = vadd.f32 0.2548296, %v1301_v20 }
 0xf5c   :  { %v1314_v49 = vmul.f32 %v1776_v25, %v1304_v24  ;;  %v1305_v51 = vmul.f32 %v1774_v30, %v1303_v48 }
 0xf5e   :  { %v1316_v53 = vsub.f32 1.0, %v1314_v49  ;;  %v1315_v54 = vmul.f32 %v1778_v52, %v1305_v51 }
 0xf60   :  { %v1320_v55 = vsub.f32 0.0, %v1316_v53  ;;  %v1317_v56 = vsub.f32 1.0, %v1315_v54 }
 0xf62   :  { %v1322_v57 = vsel %vm1318_vm7, %v1316_v53, %v1320_v55  ;;  %v1321_v39 = vsub.f32 0.0, %v1317_v56 }
 0xf63   :  { %v1324_v58 = vadd.f32 1.0, %v1322_v57 }
 0xf64   :  { %v1323_v59 = vsel %vm1319_vm8, %v1317_v56, %v1321_v39 }
 0xf65   :  { %v1325_v62 = vadd.f32 1.0, %v1323_v59  ;;  %v1326_v63 = vmul.f32 %v1324_v58, %v1274_v60 }
 0xf67   :  { %v1327_v2 = vmul.f32 %v1325_v62, %v1275_v61 }
 0xf69   :  { %v1328_v3 = vpack.c.bf16 %v1327_v2, %v1326_v63 }
 0xf6b   :  { %1683 = vmatmul.mubr.bf16.vlgmr.msra.gmra.mrb[32].mxu1 %v1328_v3 }
0x103e   :  { %v1427_v4 = vpop.f32.mrb[32].mxu1 }
0x103f   :  { %v1434_v6 = vadd.f32 %v1427_v4, %v2085_v31  ;;  %v1684_v7 = vpop.f32.mrb[33].mxu1 }
0x1040   :  { %v1430_v8 = vpop.f32.mrb[34].mxu1 }
0x1041   :  { %v1443_v9 = vadd.f32 %v1493_v5, %v1434_v6  ;;  %v1435_v11 = vadd.f32 %v1430_v8, %v2088_v35  ;;  %v1685_v12 = vpop.f32.mrb[35].mxu1 }
0x1043   :  { %1445 = vst.msk [vmem:[%s2172_s13] sm:$0xff] %vm49_vm0, %v1443_v9  ;;  %v1444_v10 = vadd.f32 %v1493_v5, %v1435_v11 }
0x1045   :  { %1446 = vst.msk [vmem:[%s2172_s13 + $0x8] sm:$0xff] %vm49_vm0, %v1444_v10 }

</bundles_post_ra>
